<compile_context>
chip_gen: v7x
topology: tpu7x:2x2x1
jax: 0.10.0
libtpu: 0.0.40
codegen_flags: <defaults>
</compile_context>

<pallas_src>
import jax
import jax.numpy as jnp
from jax.experimental import pallas as pl
from jax.experimental.pallas import tpu as pltpu


def _round_up(x, m):
    return (x + m - 1) // m * m


# --------------------------------------------------------------------------- #
# Kernel
# --------------------------------------------------------------------------- #
def _fused_heads_kernel(x_ref, w_ref, b_ref, o_ref):
    # relu in the streamed dtype; cast only the MXU operand to the weight dtype;
    # accumulate in f32; add bias in f32; store in the requested output dtype.
    h = jnp.maximum(x_ref[...], 0.0)
    acc = jnp.dot(h.astype(w_ref.dtype), w_ref[...],
                  preferred_element_type=jnp.float32)
    o_ref[...] = (acc + b_ref[...]).astype(o_ref.dtype)


# --------------------------------------------------------------------------- #
# Parameter folding (off the hot path)
# --------------------------------------------------------------------------- #
def fuse_head_res_params(head_params, weight_dtype=jnp.float32):
    """Fold every Head_Res_Net into one column block of a single fused weight.

    head_params: sequence of (w1, b1, w2, b2) per head, PyTorch (out, in) layout:
        w1: (W, W), b1: (W,), w2: (H_k, W), b2: (H_k,)
    Returns (w_all, b_all): (W, sum H_k) weight and (1, sum H_k) f32 bias.
    """
    w_cols, b_cols = [], []
    for w1, b1, w2, b2 in head_params:
        w1 = jnp.asarray(w1, jnp.float32)
        b1 = jnp.asarray(b1, jnp.float32)
        w2 = jnp.asarray(w2, jnp.float32)
        b2 = jnp.asarray(b2, jnp.float32)
        w_cols.append((w2 + w2 @ w1).T)     # (I + W1^T) @ W2^T  -> (W, H_k)
        b_cols.append(w2 @ b1 + b2)         # (H_k,)
    w_all = jnp.concatenate(w_cols, axis=1).astype(weight_dtype)
    b_all = jnp.concatenate(b_cols)[None, :].astype(jnp.float32)
    return w_all, b_all


# --------------------------------------------------------------------------- #
# Pallas wrapper
# --------------------------------------------------------------------------- #
def fused_heads_matmul(hidden, w_all, b_all, *, block_rows=16384,
                       min_grid_steps=4, out_dtype=jnp.float32):
    """hidden: (N, W) streamed in its own dtype; returns (N, H_total) deltas."""
    N, W = hidden.shape
    Wc, H = w_all.shape
    assert Wc == W, "feature dim mismatch"
    assert block_rows % 8 == 0, "block_rows must be a multiple of 8"

    # Row tile: big enough to amortize per-step pipeline overhead, small enough
    # that the grid has >= min_grid_steps steps (keeps both v7x TCs busy), and a
    # multiple of 8 (or the whole batch when N <= 8) for the (8,128) constraint.
    if N <= 8:
        tn = N
    else:
        tn = max(8, _round_up(pl.cdiv(N, max(1, min_grid_steps)), 8))
        tn = min(tn, block_rows, _round_up(N, 8))
    grid = (pl.cdiv(N, tn),)

    # VMEM budget from *lane-padded* buffers (last dims pad to 128 lanes),
    # double-buffered inputs and outputs, plus headroom for internal scratch.
    lane, sub = 128, 8
    isz = lambda dt: jnp.dtype(dt).itemsize
    x_buf = _round_up(tn, sub) * _round_up(W, lane) * isz(hidden.dtype)
    o_buf = _round_up(tn, sub) * _round_up(H, lane) * isz(out_dtype)
    w_buf = _round_up(W, sub) * _round_up(H, lane) * isz(w_all.dtype)
    b_buf = sub * _round_up(H, lane) * 4
    vmem_limit = 2 * (x_buf + o_buf + w_buf + b_buf) + (2 << 20)
    vmem_limit = int(min(max(vmem_limit, 32 << 20), 120 << 20))

    return pl.pallas_call(
        _fused_heads_kernel,
        out_shape=jax.ShapeDtypeStruct((N, H), out_dtype),
        grid_spec=pl.GridSpec(
            grid=grid,
            in_specs=[
                pl.BlockSpec((tn, W), lambda i: (i, 0)),   # hidden: streamed row tiles
                pl.BlockSpec((W, H), lambda i: (0, 0)),    # fused weight: VMEM-resident
                pl.BlockSpec((1, H), lambda i: (0, 0)),    # fused bias:   VMEM-resident
            ],
            out_specs=pl.BlockSpec((tn, H), lambda i: (i, 0)),
        ),
        compiler_params=pltpu.CompilerParams(
            dimension_semantics=("parallel",),             # megacore-shardable rows
            vmem_limit_bytes=vmem_limit,
        ),
    )(hidden, w_all, b_all)


def _split_cols(x, dims):
    outs, off = [], 0
    for d in dims:
        outs.append(x[:, off:off + d])
        off += d
    return outs


def deformation_heads_apply(hidden, rays_pts_emb, scales_emb, rotations_emb,
                            opacity_emb, w_all, b_all,
                            head_dims=(3, 3, 4, 1), **kwargs):
    """Mirrors Deformation.forward_dynamic's head stage (use_res=True)."""
    deltas = fused_heads_matmul(hidden, w_all, b_all, **kwargs).astype(jnp.float32)
    d_pos, d_scl, d_rot, d_op = _split_cols(deltas, head_dims)
    pts = rays_pts_emb[:, :3] + d_pos
    scales = scales_emb[:, :3] + d_scl
    rotations = rotations_emb[:, :4] + d_rot
    opacity = opacity_emb[:, :1] + d_op
    return pts, scales, rotations, opacity


# --------------------------------------------------------------------------- #
# Pure-JAX reference (matches the PyTorch forward exactly)
# --------------------------------------------------------------------------- #
def _head_res_ref(x, w1, b1, w2, b2):
    h = jnp.maximum(x, 0.0)
    y = h + h @ w1.T + b1
    return y @ w2.T + b2


def deformation_heads_ref(hidden, rays_pts_emb, scales_emb, rotations_emb,
                          opacity_emb, head_params):
    d = [_head_res_ref(hidden, *p) for p in head_params]
    return (rays_pts_emb[:, :3] + d[0],
            scales_emb[:, :3] + d[1],
            rotations_emb[:, :4] + d[2],
            opacity_emb[:, :1] + d[3])


# --------------------------------------------------------------------------- #
if __name__ == "__main__":
    # Small shapes consistent with the module: batch N=64 points, W=32 hidden,
    # heads = pos(3), scales(3), rotations(4), opacity(1).
    N, W = 64, 32
    head_dims = (3, 3, 4, 1)

    key = jax.random.PRNGKey(0)
    k_hidden, k_pts, k_scl, k_rot, k_op, k_par = jax.random.split(key, 6)

    hidden = jax.random.normal(k_hidden, (N, W), dtype=jnp.float32)
    rays_pts_emb = jax.random.normal(k_pts, (N, 3), dtype=jnp.float32)
    scales_emb = jax.random.normal(k_scl, (N, 3), dtype=jnp.float32)
    rotations_emb = jax.random.normal(k_rot, (N, 4), dtype=jnp.float32)
    opacity_emb = jax.random.normal(k_op, (N, 1), dtype=jnp.float32)

    head_params = []
    pk = k_par
    for h_k in head_dims:
        pk, kw1, kb1, kw2, kb2 = jax.random.split(pk, 5)
        head_params.append((
            jax.random.normal(kw1, (W, W), dtype=jnp.float32) * 0.05,
            jax.random.normal(kb1, (W,), dtype=jnp.float32) * 0.05,
            jax.random.normal(kw2, (h_k, W), dtype=jnp.float32) * 0.05,
            jax.random.normal(kb2, (h_k,), dtype=jnp.float32) * 0.05,
        ))

    ref = deformation_heads_ref(hidden, rays_pts_emb, scales_emb,
                                rotations_emb, opacity_emb, head_params)

    # 1) default path: f32 streaming, f32 resident fused weights, f32 output.
    w_all, b_all = fuse_head_res_params(head_params)            # f32 (default)
    out = deformation_heads_apply(hidden, rays_pts_emb, scales_emb,
                                  rotations_emb, opacity_emb, w_all, b_all,
                                  head_dims=head_dims)
    out = jax.block_until_ready(out)
    for o, r in zip(out, ref):
        assert o.shape == r.shape
        assert jnp.allclose(o, r, atol=1e-4, rtol=1e-4), "f32 mismatch vs reference"

    # 2) optional bf16 weight + bf16 output path (looser tolerance for rounding).
    w_bf, b_bf = fuse_head_res_params(head_params, weight_dtype=jnp.bfloat16)
    out_bf = deformation_heads_apply(hidden, rays_pts_emb, scales_emb,
                                     rotations_emb, opacity_emb, w_bf, b_bf,
                                     head_dims=head_dims, out_dtype=jnp.bfloat16)
    out_bf = jax.block_until_ready(out_bf)
    for o, r in zip(out_bf, ref):
        assert o.shape == r.shape
        assert jnp.allclose(o, r, atol=3e-2, rtol=3e-2), "bf16 mismatch vs reference"

    print("KERNEL_OK")
</pallas_src>

<mosaic_0001>
module attributes {stable_mosaic.version = 11 : i64} {
  func.func @_fused_heads_kernel(%arg0: i32, %arg1: memref<16x32xf32, #tpu.memory_space<vmem>>, %arg2: memref<32x11xf32, #tpu.memory_space<vmem>>, %arg3: memref<1x11xf32, #tpu.memory_space<vmem>>, %arg4: memref<16x11xf32, #tpu.memory_space<vmem>>) attributes {dimension_semantics = [#tpu.dimension_semantics<parallel>], iteration_bounds = array<i64: 4>, scalar_prefetch = 0 : i64, scratch_operands = 0 : i64, tpu.core_type = #tpu.core_type<tc>, window_params = [{transform_indices = @transform_0, window_bounds = array<i64: 16, 32>}, {pipeline_mode = #tpu.pipeline_mode<synchronous>, transform_indices = @transform_1, window_bounds = array<i64: 32, 11>}, {pipeline_mode = #tpu.pipeline_mode<synchronous>, transform_indices = @transform_2, window_bounds = array<i64: 1, 11>}, {transform_indices = @transform_3, window_bounds = array<i64: 16, 11>}]} {
    %c0 = arith.constant 0 : index
    %c0_0 = arith.constant 0 : index
    %0 = vector.load %arg1[%c0, %c0_0] : memref<16x32xf32, #tpu.memory_space<vmem>>, vector<16x32xf32>
    %cst = arith.constant 0.000000e+00 : f32
    %1 = vector.broadcast %cst : f32 to vector<16x32xf32>
    %2 = arith.maximumf %0, %1 : vector<16x32xf32>
    %c0_1 = arith.constant 0 : index
    %c0_2 = arith.constant 0 : index
    %3 = vector.load %arg2[%c0_1, %c0_2] : memref<32x11xf32, #tpu.memory_space<vmem>>, vector<32x11xf32>
    %cst_3 = arith.constant dense<0.000000e+00> : vector<16x11xf32>
    %4 = tpu.matmul %2, %3, %cst_3 {dimension_numbers = #tpu.dot_dimension_numbers<[1], [0], [0], [1], [0, 0, 1, 1], [], []>} : vector<16x32xf32>, vector<32x11xf32>, vector<16x11xf32> -> vector<16x11xf32>
    %c0_4 = arith.constant 0 : index
    %c0_5 = arith.constant 0 : index
    %5 = vector.load %arg3[%c0_4, %c0_5] : memref<1x11xf32, #tpu.memory_space<vmem>>, vector<1x11xf32>
    %6 = vector.broadcast %5 : vector<1x11xf32> to vector<16x11xf32>
    %7 = arith.addf %4, %6 : vector<16x11xf32>
    %c0_6 = arith.constant 0 : index
    %c0_7 = arith.constant 0 : index
    %8 = vector.load %arg4[%c0_6, %c0_7] : memref<16x11xf32, #tpu.memory_space<vmem>>, vector<16x11xf32>
    tpu.vector_store %arg4[%c0_6, %c0_7], %7 {strides = array<i32>} : memref<16x11xf32, #tpu.memory_space<vmem>>, vector<16x11xf32>,
    return
  }
  func.func @transform_0(%arg0: i32) -> (i32, i32) {
    %c0_i32 = arith.constant 0 : i32
    %c0_i32_0 = arith.constant 0 : i32
    return %arg0, %c0_i32 : i32, i32
  }
  func.func @transform_1(%arg0: i32) -> (i32, i32) {
    %c0_i32 = arith.constant 0 : i32
    %c0_i32_0 = arith.constant 0 : i32
    %c0_i32_1 = arith.constant 0 : i32
    return %c0_i32, %c0_i32_0 : i32, i32
  }
  func.func @transform_2(%arg0: i32) -> (i32, i32) {
    %c0_i32 = arith.constant 0 : i32
    %c0_i32_0 = arith.constant 0 : i32
    %c0_i32_1 = arith.constant 0 : i32
    return %c0_i32, %c0_i32_0 : i32, i32
  }
  func.func @transform_3(%arg0: i32) -> (i32, i32) {
    %c0_i32 = arith.constant 0 : i32
    %c0_i32_0 = arith.constant 0 : i32
    return %arg0, %c0_i32 : i32, i32
  }
}

</mosaic_0001>

<bundles_post_ra>
// kernel: tpu_custom_call.1
= control target key start
LH: loop header
LB: loop body
LE: loop exit
PB: predicated region body
PF: predicated region fallthrough
CT: control target
= control target key end

     0   :  { %s405_s12 = smov 0   ;;  %s437_s0 = inlined_call_operand.vmem [shape: f32[64,32], index: 0, kind: input, shape index: {}]   ;;  %s438_s1 = inlined_call_operand.vmem [shape: f32[32,11], index: 1, kind: input, shape index: {}]   ;;  %s439_s2 = inlined_call_operand.vmem [shape: f32[1,11], index: 2, kind: input, shape index: {}]   ;;  %s440_s3 = inlined_call_operand.vmem [shape: f32[64,11], index: 3, kind: output, shape index: {}]  }
   0x1 LB: > { %s330_s13 = sadd.s32 4294967295, %s383_s12   ;;  %p334_p0 = scmp.ge.s32.totalorder %s383_s12, 1  ;;  %s383_s12 = sphi %s405_s12, %s13_s12  }
   0x2   : > { %p138_p1 = scmp.lt.s32.totalorder %s383_s12, 5 }
   0x4   : > { %p139_p2 = pnand %p334_p0, %p138_p1 }
   0x5   : > { %v178_v0 = vld [vmem:[%s438_s1] sm:$0xff] (!%p139_p2)  ;;  %v179_v1 = vld [vmem:[%s438_s1 + $0x8] sm:$0xff] (!%p139_p2)  ;;  %v180_v2 = vld [vmem:[%s438_s1 + $0x10] sm:$0xff] (!%p139_p2)  ;;  %s335_s20 = sshll.u32 (!%p139_p2), %s330_s13, 1  ;;  %vm189_vm0 = vcmask (!%p139_p2), 261120   ;;  %vm271_vm1 = vcmask (!%p139_p2), 89088  }
   0x6   : > { %142 = sbr.rel (%p139_p2) target bundleno = 236 (0xec), region = 32  ;;  %v361_v3 = vpack.c.bf16 (!%p139_p2), %v179_v1, %v178_v0  ;;  %v181_v4 = vld [vmem:[%s438_s1 + $0x18] sm:$0xff] (!%p139_p2)  ;;  %p163_p3 = scmp.lt.s32.totalorder (!%p139_p2), %s335_s20, 7  ;;  %v339_v10 = vld [vmem:[%s439_s2] ss:$0 sm:$0xff] (!%p139_p2) }
   0x7   : > { %v365_v5 = vpack.c.bf16 (!%p139_p2), %v181_v4, %v180_v2 }
   0x8   : > { %362 = vmatprep.subr.bf16.mxu0 (!%p139_p2), %v361_v3 }
   0x9   : > { %364 = vmatpush3.bf16.msra.mxu0 (!%p139_p2), %v361_v3 }
   0xa   : > { %366 = vmatprep.subr.bf16.mxu0 (!%p139_p2), %v365_v5 }
   0xd   : > { %s442_s20 = smov (!%p163_p3, %s335_s20), 7  ;;  %368 = vmatpush3.bf16.msra.mxu0 %v365_v5 }
   0xe   : > { %s336_s23 = sshll.u32 %s442_s20, 3 }
   0xf   : > { %s166_s26 = scalar_lea.vmem %s437_s0, %s336_s23  ;;  %s172_s4 = scalar_lea.vmem %s440_s3, %s336_s23 }
  0x10   : > { %v174_v6 = vld [vmem:[%s166_s26] sm:$0xff]  ;;  %v175_v7 = vld [vmem:[%s166_s26 + $0x8] sm:$0xff] }
  0x11   : > { %v176_v8 = vmax.f32 %v174_v6, 0.0  ;;  %v177_v9 = vmax.f32 %v175_v7, 0.0 }
  0x13   : > { %358 = vmatprep.mubr.msk.f32.mxu0 %vm189_vm0, %v176_v8 }
  0x14   : > { %359 = vmatmul.mubr.msk.f32.vlgmr.msra.gmra.mrb[0].mxu0 %vm189_vm0, %v177_v9 }
  0xe7   : > { %v360_v11 = vpop.f32.mrb[0].mxu0 }
  0xe8   : > { %v262_v12 = vpop.f32.mrb[1].mxu0  ;;  %v268_v14 = vadd.f32 %v360_v11, %v339_v10 }
  0xe9   : > { %v263_v13 = vadd.f32 %v339_v10, %v262_v12 }
  0xea   : > { %273 = vst.msk [vmem:[%s172_s4 + $0x8] sm:$0xff] %vm271_vm1, %v268_v14 }
  0xeb   : > { %272 = vst.msk [vmem:[%s172_s4] sm:$0xff] %vm271_vm1, %v263_v13 }
  0xec PF: > { %s13_s12 = sadd.s32 1, %s383_s12  }
  0xed   : > { %p10_p4 = scmp.ge.s32.totalorder %s13_s12, 6  }
  0xef   :  { %12 = sbr.rel (!%p10_p4) target bundleno = 1 (0x1), region = 62 }

</bundles_post_ra>
